<compile_context>
chip_gen: v6e
topology: v6e:2x2x1
jax: 0.10.0
libtpu: 0.0.40
codegen_flags: <defaults>
</compile_context>

<pallas_src>
import functools

import jax
import jax.numpy as jnp
from jax.experimental import pallas as pl
from jax.experimental.pallas import tpu as pltpu


def _vmem_capacity_bytes() -> int:
    """Physical VMEM of the local TPU; conservative (v7x-safe) fallback."""
    try:
        return int(pltpu.get_tpu_info().vmem_capacity_bytes)
    except Exception:
        return 64 << 20


def channel_gate_kernel(x_ref, w1t_ref, b1_ref, w2t_ref, b2_ref, o_ref, *, inv_hw):
    """One grid step: Nb batch elements, full channel dim, full spatial extent.

    x_ref/o_ref : (Nb, C, HW)  activation dtype (f32 or bf16)
    w1t_ref     : (C, Cr)   b1_ref: (1, Cr)   first Linear  (pre-transposed)
    w2t_ref     : (Cr, C)   b2_ref: (1, C)    second Linear (pre-transposed)
    """
    nb = x_ref.shape[0]

    x = x_ref[...]                                   # native dtype (f32 / bf16)
    xf = x.astype(jnp.float32)

    # --- pooling: one reduce pair over the whole block ------------------------
    avg = jnp.sum(xf, axis=-1) * inv_hw              # (Nb, C)
    mx = jnp.max(xf, axis=-1)                        # (Nb, C)
    pooled = jnp.concatenate([avg, mx], axis=0)      # (2*Nb, C): avg rows, then max

    # --- shared MLP, fused over {avg, max} x Nb (tiny dots; f32 accumulation) --
    h = jnp.maximum(
        jnp.dot(pooled, w1t_ref[...], preferred_element_type=jnp.float32)
        + b1_ref[...], 0.0)                          # (2*Nb, Cr)
    att = jnp.dot(h, w2t_ref[...],
                  preferred_element_type=jnp.float32) + b2_ref[...]   # (2*Nb, C)
    scale = jax.nn.sigmoid(att[:nb] + att[nb:])      # (Nb, C)  = sigmoid(avg+max)

    # --- rescale: single broadcast multiply over the block ---------------------
    # bf16 activations: multiply in bf16 (only the tiny gate is cast down).
    o_ref[...] = (x * scale.astype(x.dtype)[:, :, None]).astype(o_ref.dtype)


def channel_gate(x, w1, b1, w2, b2, *, min_steps=None):
    """ChannelGate forward. x: (N, C, H, W). PyTorch Linear weights:
    w1: (Cr, C), b1: (Cr,), w2: (C, Cr), b2: (C,).
    Returns x * sigmoid(mlp(avg_pool(x)) + mlp(max_pool(x)))."""
    N, C, H, W = x.shape
    HW = H * W
    Cr = w1.shape[0]

    # No spatial padding: the block's last dim equals the full array extent,
    # which is always a legal block shape; masked stores are handled in-kernel.
    x3 = x.reshape(N, C, HW)

    # Pre-transposed f32 weights / row-vector biases (no in-kernel transpose).
    w1t = jnp.transpose(w1).astype(jnp.float32)          # (C, Cr)
    w2t = jnp.transpose(w2).astype(jnp.float32)          # (Cr, C)
    b1r = b1.reshape(1, Cr).astype(jnp.float32)
    b2r = b2.reshape(1, C).astype(jnp.float32)

    # --- per-generation VMEM budget --------------------------------------------
    vmem_cap = _vmem_capacity_bytes()
    if vmem_cap >= (96 << 20):          # v5e / v6e class: 128 MiB VMEM, 1 TC
        block_target = 14 << 20
        vmem_limit = 96 << 20
        num_tc = 1
    else:                               # v7x class: 64 MiB VMEM, 2 TCs
        block_target = 8 << 20
        vmem_limit = 48 << 20
        num_tc = 2

    # --- pick Nb (batch elements per grid step) from the byte budget -----------
    itemsize = jnp.dtype(x.dtype).itemsize
    per_elem = C * HW * itemsize
    steps = max(1, pl.cdiv(N * per_elem, block_target))
    if min_steps is not None:
        steps = max(steps, int(min_steps))
    steps = min(steps, N)
    if num_tc > 1:
        steps = max(steps, min(N, num_tc))      # give both TensorCores work
    nb = pl.cdiv(N, steps)
    grid_steps = pl.cdiv(N, nb)
    if num_tc > 1 and grid_steps > 1 and grid_steps % num_tc:
        grid_steps += num_tc - (grid_steps % num_tc)   # even grid -> TC balance
    Np = grid_steps * nb

    if Np != N:
        # Pad batch (cheap, zero rows) instead of degrading Nb for awkward N.
        x3 = jnp.pad(x3, ((0, Np - N), (0, 0), (0, 0)))

    # Footprint ~ 4 * block (in + out, double-buffered) + tiny weights.
    block_bytes = nb * per_elem
    vmem_limit = max(vmem_limit, 4 * block_bytes + (2 << 20))
    vmem_limit = int(min(vmem_limit, vmem_cap - (8 << 20)))

    kernel = functools.partial(channel_gate_kernel, inv_hw=1.0 / HW)

    cost = pl.CostEstimate(
        flops=int(3 * Np * C * HW + 8 * Np * C * Cr),
        transcendentals=int(Np * C),
        bytes_accessed=int(2 * Np * C * HW * itemsize
                           + 4 * (w1t.size + w2t.size + b1r.size + b2r.size)),
    )

    out = pl.pallas_call(
        kernel,
        out_shape=jax.ShapeDtypeStruct((Np, C, HW), x.dtype),
        grid_spec=pltpu.PrefetchScalarGridSpec(
            num_scalar_prefetch=0,
            grid=(grid_steps,),
            in_specs=[
                pl.BlockSpec((nb, C, HW), lambda n: (n, 0, 0)),   # x tile
                pl.BlockSpec((C, Cr), lambda n: (0, 0)),          # w1^T (whole)
                pl.BlockSpec((1, Cr), lambda n: (0, 0)),          # b1
                pl.BlockSpec((Cr, C), lambda n: (0, 0)),          # w2^T (whole)
                pl.BlockSpec((1, C), lambda n: (0, 0)),           # b2
            ],
            out_specs=pl.BlockSpec((nb, C, HW), lambda n: (n, 0, 0)),
        ),
        compiler_params=pltpu.CompilerParams(
            dimension_semantics=("parallel",),
            vmem_limit_bytes=vmem_limit,
        ),
        cost_estimate=cost,
    )(x3, w1t, b1r, w2t, b2r)

    if Np != N:
        out = out[:N]
    return out.reshape(N, C, H, W)


def channel_gate_reference(x, w1, b1, w2, b2):
    avg = jnp.mean(x, axis=(2, 3))                      # (N, C)
    mx = jnp.max(x, axis=(2, 3))                        # (N, C)

    def mlp(v):
        return jnp.maximum(v @ w1.T + b1, 0.0) @ w2.T + b2

    att = jax.nn.sigmoid(mlp(avg) + mlp(mx))            # (N, C)
    return x * att[:, :, None, None]


if __name__ == "__main__":
    # Module config: gate_channels=8, reduction_ratio=4, pool_types=['avg','max']
    N, C, H, W = 2, 8, 16, 16
    Cr = C // 4

    key = jax.random.PRNGKey(0)
    kx, k1, k2, k3, k4 = jax.random.split(key, 5)
    x = jax.random.normal(kx, (N, C, H, W), dtype=jnp.float32)

    # Deterministic synthetic parameters (PyTorch Linear weight shapes).
    w1 = 0.3 * jax.random.normal(k1, (Cr, C), dtype=jnp.float32)
    b1 = 0.1 * jax.random.normal(k2, (Cr,), dtype=jnp.float32)
    w2 = 0.3 * jax.random.normal(k3, (C, Cr), dtype=jnp.float32)
    b2 = 0.1 * jax.random.normal(k4, (C,), dtype=jnp.float32)

    # 1) f32, HW = 256 (multiple of 128)
    out = jax.block_until_ready(channel_gate(x, w1, b1, w2, b2))
    ref = channel_gate_reference(x, w1, b1, w2, b2)
    assert out.shape == (N, C, H, W)
    assert jnp.allclose(out, ref, rtol=1e-5, atol=1e-5), "f32 mismatch vs reference"

    # 2) f32, non-128-multiple HW (7x7 = 49) — full-extent last block dim, no pad
    x_s = jax.random.normal(jax.random.PRNGKey(1), (8, C, 7, 7), dtype=jnp.float32)
    out_s = jax.block_until_ready(channel_gate(x_s, w1, b1, w2, b2))
    ref_s = channel_gate_reference(x_s, w1, b1, w2, b2)
    assert jnp.allclose(out_s, ref_s, rtol=1e-5, atol=1e-5), "non-128 HW mismatch"

    # 3) batch that doesn't divide the step count — exercises the batch-pad path
    x_p = jax.random.normal(jax.random.PRNGKey(2), (5, C, 7, 7), dtype=jnp.float32)
    out_p = jax.block_until_ready(channel_gate(x_p, w1, b1, w2, b2, min_steps=2))
    ref_p = channel_gate_reference(x_p, w1, b1, w2, b2)
    assert jnp.allclose(out_p, ref_p, rtol=1e-5, atol=1e-5), "padded-batch mismatch"

    # 4) bf16 activations (weights stay f32; pooling/MLP in f32, rescale in bf16)
    x_bf = x.astype(jnp.bfloat16)
    out_bf = jax.block_until_ready(channel_gate(x_bf, w1, b1, w2, b2))
    ref_bf = channel_gate_reference(x_bf.astype(jnp.float32), w1, b1, w2, b2)
    assert out_bf.dtype == jnp.bfloat16
    assert jnp.allclose(out_bf.astype(jnp.float32), ref_bf, rtol=3e-2, atol=3e-2), \
        "bf16 mismatch vs reference"

    print("KERNEL_OK")
</pallas_src>

<mosaic_0001>
module attributes {stable_mosaic.version = 11 : i64} {
  func.func @channel_gate_kernel(%arg0: i32, %arg1: memref<1x8x256xf32, #tpu.memory_space<vmem>>, %arg2: memref<8x2xf32, #tpu.memory_space<vmem>>, %arg3: memref<1x2xf32, #tpu.memory_space<vmem>>, %arg4: memref<2x8xf32, #tpu.memory_space<vmem>>, %arg5: memref<1x8xf32, #tpu.memory_space<vmem>>, %arg6: memref<1x8x256xf32, #tpu.memory_space<vmem>>) attributes {dimension_semantics = [#tpu.dimension_semantics<parallel>], iteration_bounds = array<i64: 2>, scalar_prefetch = 0 : i64, scratch_operands = 0 : i64, tpu.core_type = #tpu.core_type<tc>, window_params = [{transform_indices = @transform_0, window_bounds = array<i64: 1, 8, 256>}, {pipeline_mode = #tpu.pipeline_mode<synchronous>, transform_indices = @transform_1, window_bounds = array<i64: 8, 2>}, {pipeline_mode = #tpu.pipeline_mode<synchronous>, transform_indices = @transform_2, window_bounds = array<i64: 1, 2>}, {pipeline_mode = #tpu.pipeline_mode<synchronous>, transform_indices = @transform_3, window_bounds = array<i64: 2, 8>}, {pipeline_mode = #tpu.pipeline_mode<synchronous>, transform_indices = @transform_4, window_bounds = array<i64: 1, 8>}, {transform_indices = @transform_5, window_bounds = array<i64: 1, 8, 256>}]} {
    %c0 = arith.constant 0 : index
    %c0_0 = arith.constant 0 : index
    %c0_1 = arith.constant 0 : index
    %0 = vector.load %arg1[%c0, %c0_0, %c0_1] : memref<1x8x256xf32, #tpu.memory_space<vmem>>, vector<1x8x256xf32>
    %cst = arith.constant dense<0.000000e+00> : vector<1x8xf32>
    %1 = vector.multi_reduction <add>, %0, %cst [2] : vector<1x8x256xf32> to vector<1x8xf32>
    %cst_2 = arith.constant 3.906250e-03 : f32
    %2 = vector.broadcast %cst_2 : f32 to vector<1x8xf32>
    %3 = arith.mulf %1, %2 : vector<1x8xf32>
    %cst_3 = arith.constant dense<0xFF800000> : vector<1x8xf32>
    %4 = vector.multi_reduction <maximumf>, %0, %cst_3 [2] : vector<1x8x256xf32> to vector<1x8xf32>
    %5 = tpu.concatenate %3, %4 in 0 : vector<1x8xf32>, vector<1x8xf32> -> vector<2x8xf32>
    %c0_4 = arith.constant 0 : index
    %c0_5 = arith.constant 0 : index
    %6 = vector.load %arg2[%c0_4, %c0_5] : memref<8x2xf32, #tpu.memory_space<vmem>>, vector<8x2xf32>
    %cst_6 = arith.constant dense<0.000000e+00> : vector<2x2xf32>
    %7 = tpu.matmul %5, %6, %cst_6 {dimension_numbers = #tpu.dot_dimension_numbers<[1], [0], [0], [1], [0, 0, 1, 1], [], []>} : vector<2x8xf32>, vector<8x2xf32>, vector<2x2xf32> -> vector<2x2xf32>
    %c0_7 = arith.constant 0 : index
    %c0_8 = arith.constant 0 : index
    %8 = vector.load %arg3[%c0_7, %c0_8] : memref<1x2xf32, #tpu.memory_space<vmem>>, vector<1x2xf32>
    %9 = vector.broadcast %8 : vector<1x2xf32> to vector<2x2xf32>
    %10 = arith.addf %7, %9 : vector<2x2xf32>
    %cst_9 = arith.constant 0.000000e+00 : f32
    %11 = vector.broadcast %cst_9 : f32 to vector<2x2xf32>
    %12 = arith.maximumf %10, %11 : vector<2x2xf32>
    %c0_10 = arith.constant 0 : index
    %c0_11 = arith.constant 0 : index
    %13 = vector.load %arg4[%c0_10, %c0_11] : memref<2x8xf32, #tpu.memory_space<vmem>>, vector<2x8xf32>
    %cst_12 = arith.constant dense<0.000000e+00> : vector<2x8xf32>
    %14 = tpu.matmul %12, %13, %cst_12 {dimension_numbers = #tpu.dot_dimension_numbers<[1], [0], [0], [1], [0, 0, 1, 1], [], []>} : vector<2x2xf32>, vector<2x8xf32>, vector<2x8xf32> -> vector<2x8xf32>
    %c0_13 = arith.constant 0 : index
    %c0_14 = arith.constant 0 : index
    %15 = vector.load %arg5[%c0_13, %c0_14] : memref<1x8xf32, #tpu.memory_space<vmem>>, vector<1x8xf32>
    %16 = vector.broadcast %15 : vector<1x8xf32> to vector<2x8xf32>
    %17 = arith.addf %14, %16 : vector<2x8xf32>
    %18 = vector.extract_strided_slice %17 {offsets = [0, 0], sizes = [1, 8], strides = [1, 1]} : vector<2x8xf32> to vector<1x8xf32>
    %19 = vector.extract_strided_slice %17 {offsets = [1, 0], sizes = [1, 8], strides = [1, 1]} : vector<2x8xf32> to vector<1x8xf32>
    %20 = arith.addf %18, %19 : vector<1x8xf32>
    %21 = arith.negf %20 : vector<1x8xf32>
    %22 = math.exp %21 : vector<1x8xf32>
    %cst_15 = arith.constant 1.000000e+00 : f32
    %23 = vector.broadcast %cst_15 : f32 to vector<1x8xf32>
    %24 = arith.addf %23, %22 : vector<1x8xf32>
    %25 = arith.divf %23, %24 : vector<1x8xf32>
    %26 = vector.shape_cast %25 : vector<1x8xf32> to vector<1x8x1xf32>
    %27 = vector.broadcast %26 : vector<1x8x1xf32> to vector<1x8x256xf32>
    %28 = arith.mulf %0, %27 : vector<1x8x256xf32>
    %c0_16 = arith.constant 0 : index
    %c0_17 = arith.constant 0 : index
    %c0_18 = arith.constant 0 : index
    %29 = vector.load %arg6[%c0_16, %c0_17, %c0_18] : memref<1x8x256xf32, #tpu.memory_space<vmem>>, vector<1x8x256xf32>
    tpu.vector_store %arg6[%c0_16, %c0_17, %c0_18], %28 {strides = array<i32>} : memref<1x8x256xf32, #tpu.memory_space<vmem>>, vector<1x8x256xf32>,
    return
  }
  func.func @transform_0(%arg0: i32) -> (i32, i32, i32) {
    %c0_i32 = arith.constant 0 : i32
    %c0_i32_0 = arith.constant 0 : i32
    %c0_i32_1 = arith.constant 0 : i32
    return %arg0, %c0_i32, %c0_i32_0 : i32, i32, i32
  }
  func.func @transform_1(%arg0: i32) -> (i32, i32) {
    %c0_i32 = arith.constant 0 : i32
    %c0_i32_0 = arith.constant 0 : i32
    %c0_i32_1 = arith.constant 0 : i32
    return %c0_i32, %c0_i32_0 : i32, i32
  }
  func.func @transform_2(%arg0: i32) -> (i32, i32) {
    %c0_i32 = arith.constant 0 : i32
    %c0_i32_0 = arith.constant 0 : i32
    %c0_i32_1 = arith.constant 0 : i32
    return %c0_i32, %c0_i32_0 : i32, i32
  }
  func.func @transform_3(%arg0: i32) -> (i32, i32) {
    %c0_i32 = arith.constant 0 : i32
    %c0_i32_0 = arith.constant 0 : i32
    %c0_i32_1 = arith.constant 0 : i32
    return %c0_i32, %c0_i32_0 : i32, i32
  }
  func.func @transform_4(%arg0: i32) -> (i32, i32) {
    %c0_i32 = arith.constant 0 : i32
    %c0_i32_0 = arith.constant 0 : i32
    %c0_i32_1 = arith.constant 0 : i32
    return %c0_i32, %c0_i32_0 : i32, i32
  }
  func.func @transform_5(%arg0: i32) -> (i32, i32, i32) {
    %c0_i32 = arith.constant 0 : i32
    %c0_i32_0 = arith.constant 0 : i32
    %c0_i32_1 = arith.constant 0 : i32
    return %arg0, %c0_i32, %c0_i32_0 : i32, i32, i32
  }
}

</mosaic_0001>

<bundles_post_ra>
// kernel: tpu_custom_call.1
= control target key start
LH: loop header
LB: loop body
LE: loop exit
PB: predicated region body
PF: predicated region fallthrough
CT: control target
= control target key end

     0   :  { %10 = vsyncpa [#allocation3], 0  ;;  %s920_s0 = inlined_call_operand.hbm [shape: f32[2,8,256], index: 0, kind: input, shape index: {}]   ;;  %s921_s1 = inlined_call_operand.vmem [shape: f32[8,2], index: 1, kind: input, shape index: {}]   ;;  %s922_s2 = inlined_call_operand.vmem [shape: f32[1,2], index: 2, kind: input, shape index: {}]   ;;  %s923_s3 = inlined_call_operand.vmem [shape: f32[2,8], index: 3, kind: input, shape index: {}]   ;;  %s924_s4 = inlined_call_operand.vmem [shape: f32[1,8], index: 4, kind: input, shape index: {}]   ;;  %s925_s5 = inlined_call_operand.hbm [shape: f32[2,8,256], index: 5, kind: output, shape index: {}]  }
   0x1   :  { %12 = vsyncpa [#allocation3 + $0x1], 0 }
   0x2   :  { %13 = vsyncpa [#allocation4], 0 }
   0x3   :  { %15 = vsyncpa [#allocation4 + $0x1], 0  ;;  %s757_s18 = smov 0   ;;  %s759_s19 = smov 0  }
   0x4   :  { %s761_s20 = smov 0   ;;  %s763_s21 = smov 0  }
   0x5 LB: > { %s778_s22 = sadd.s32 4294967295, %s721_s21   ;;  %s541_s23 = sadd.s32 4294967294, %s721_s21   ;;  %s721_s21 = sphi %s763_s21, %s942_s21   ;;  %s717_s20 = sphi %s761_s20, %s941_s20   ;;  %s713_s19 = sphi %s759_s19, %s940_s19   ;;  %s709_s18 = sphi %s757_s18, %s939_s18  }
   0x6   : > { %s782_s24 = sadd.s32 1, %s721_s21   ;;  %s28_s25 = sadd.s32 1, %s717_s20 }
   0x7   : > { %s25_s26 = ssub.s32 %s721_s21, %s782_s24  ;;  %p35_p0 = scmp.ne.s32.totalorder %s717_s20, %s713_s19 }
   0x8   : > { %p26_p1 = scmp.eq.s32.totalorder %s25_s26, 0  ;;  %p36_p2 = scmp.eq.s32.totalorder %s721_s21, 0 }
   0x9   : > { %p41_p3 = scmp.ne.s32.totalorder %s713_s19, %s709_s18  ;;  %p42_p4 = scmp.eq.s32.totalorder %s778_s22, 0 }
   0xa   : > { %s794_s27 = scalar_select %p26_p1, %s717_s20, %s28_s25  }
   0xb   : > { %p796_p5 = por %p36_p2, %p35_p0  ;;  %p800_p6 = por %p42_p4, %p41_p3 }
   0xc   : > { %p149_p7 = scmp.eq.s32.totalorder %s778_s22, 1  ;;  %p155_p8 = scmp.eq.s32.totalorder %s541_s23, 1 }
   0xd   : > { %s929_s29 = scalar_select %p800_p6, 1, 0 }
   0xe   : > { %p589_p10 = scmp.lt.s32.totalorder %s721_s21, 2  ;;  %p807_p11 = por %p149_p7, %p35_p0 }
   0xf   : > { %p811_p12 = por %p155_p8, %p41_p3  ;;  %s187_s7 = sand.u32 1, %s717_s20  }
  0x10   : > { %s930_s30 = scalar_select %p807_p11, 1, 0 }
  0x11   : > { %s931_s6 = scalar_select %p811_p12, 1, 0 }
  0x12   : > { %s561_s8 = sshll.u32 %s721_s21, 8  ;;  %s544_s9 = sshll.u32 %s187_s7, 4 }
  0x13   : > { %s820_s12 = scalar_lea.hbm %s920_s0, %s561_s8  ;;  %s191_s13 = scalar_lea.vmem [#allocation2], %s544_s9 }
  0x14   : > { %s199_s14 = sshll.u32 %s191_s13, 4  ;;  %p824_p13 = pnand %p589_p10, %p796_p5  ;;  %s828_s14 = int_to_ptr.vmem [resolvable:$true] %s199_s14 }
  0x15   : > { %s188_s16 = scalar_lea.sflag [#allocation3], %s187_s7  ;;  %s629_s17 = scalar_lea.hbm %s820_s12, 256 }
  0x16   : > { %p630_p2 = scmp.ne.s32.totalorder %s820_s12, %s629_s17  ;;  %p631_p3 = pneg %p824_p13 }
  0x17   : > { %s634_s26 = scalar_lea.hbm %s920_s0, 512  ;;  %p635_p5 = scmp.lt.s32.totalorder %s820_s12, %s920_s0 }
  0x18   : > { %p632_p4 = pnand %p631_p3, %p630_p2  ;;  %p636_p8 = scmp.lt.s32.totalorder %s634_s26, %s629_s17 }
  0x1a   : > { %p633_p7 = pneg %p632_p4  ;;  %p637_p10 = por %p636_p8, %p635_p5 }
  0x1c   : > { %p638_p9 = pnand %p637_p10, %p633_p7 }
  0x1e   : > { %641 = shalt.err (!%p638_p9)
}
  0x1f   : > { %s642_s7 = scalar_lea.vmem %s828_s14, 256  ;;  %s723_s9 = smov [#allocation2]  }
  0x20   : > { %p643_p0 = scmp.ne.s32.totalorder %s828_s14, %s642_s7  ;;  %s647_s10 = sshll.u32 %s723_s9, 4  ;;  %s648_s10 = int_to_ptr.vmem [resolvable:$false] %s647_s10 }
  0x21   : > { %s649_s11 = scalar_lea.vmem %s648_s10, 512  ;;  %p650_p4 = scmp.lt.s32.totalorder %s828_s14, %s648_s10 }
  0x22   : > { %p645_p1 = pnand %p643_p0, %p631_p3  ;;  %p651_p12 = scmp.lt.s32.totalorder %s649_s11, %s642_s7 }
  0x24   : > { %p646_p2 = pneg %p645_p1  ;;  %p652_p11 = por %p651_p12, %p650_p4 }
  0x26   : > { %p653_p6 = pnand %p652_p11, %p646_p2 }
  0x28   : > { %656 = shalt.err (!%p653_p6)
}
  0x29   : > { %584 = dma.hbm_to_vmem [thread:$0]  (!%p824_p13), %s820_s12, 256, %s828_s14, %s188_s16  }
  0x2a   : > { %p933_p9 = scmp.lt.s32.totalorder %s721_s21, 3  ;;  %p934_p7 = scmp.ge.s32.totalorder %s721_s21, 1 }
  0x2c   : > { %p205_p0 = pnand %p934_p7, %p933_p9 }
  0x2d   : > { %s855_s13 = sand.u32 (!%p205_p0), 1, %s713_s19   ;;  %p935_p6 = scmp.ne.s32.totalorder (!%p205_p0), %s929_s29, 0 }
  0x2e   : > { %208 = sbr.rel (%p205_p0) target bundleno = 760 (0x2f8), region = 40  ;;  %s548_s17 = sshll.u32 (!%p205_p0), %s855_s13, 4 }
  0x2f   : > { %s211_s23 = scalar_lea.sflag (!%p205_p0), [#allocation3], %s855_s13  ;;  %s214_s15 = scalar_lea.vmem (!%p205_p0), [#allocation2], %s548_s17 }
  0x33   : > { %700 = dma.done.wait (%p935_p6), %s211_s23, 256  }
  0x34   : > { %702 = vsyncadd (%p935_p6), %s211_s23, 4294967040  ;;  %v241_v0 = vld [vmem:[%s214_s15] sm:$0xff]  ;;  %v242_v1 = vld [vmem:[%s214_s15 + $0x8] sm:$0xff]  ;;  %v724_v5 = vmov 0.0   ;;  %vm725_vm0 = vmmov 0   ;;  %v251_v6 = vlaneseq  ;;  %vm264_vm1 = vcmask 1040384  }
  0x35   : > { %v243_v2 = vadd.f32 %v242_v1, %v241_v0  ;;  %v247_v3 = vmax.f32 %v241_v0, %v242_v1  ;;  %v266_v4 = vld [vmem:[%s921_s1] sm:$0xff]  ;;  %567 = vmatprep.subr.mxu0 %v724_v5  ;;  %569 = vmatprep.mubr.msk.f32.mxu0 %vm725_vm0, %v724_v5  ;;  %vm274_vm2 = vcmask 64512   ;;  %vm361_vm3 = vcmask 1041408   ;;  %s562_s7 = sshll.u32 %s778_s22, 8  ;;  %s240_s9 = scalar_lea.vmem [#allocation5], %s548_s17 }
  0x36   : > { %568 = vmatpush3.msra.mxu0 %v266_v4  ;;  %572 = vmatprep.subr.mxu1 %v724_v5  ;;  %v252_v7 = vand.u32 127, %v251_v6  ;;  %v254_v8 = vshrl.u32 %v251_v6, 7  ;;  %v349_v16 = vld [vmem:[%s923_s3] sm:$0x3]  ;;  %vm357_vm4 = vcmask 15360   ;;  %s471_s10 = sshll.u32 %s240_s9, 4  ;;  %s883_s15 = scalar_lea.hbm %s925_s5, %s562_s7  ;;  %s472_s10 = int_to_ptr.vmem [resolvable:$true] %s471_s10 }
  0x37   : > { %244 = vadd.xlane.f32.xlu0 %v243_v2  ;;  %574 = vmatprep.mubr.msk.f32.mxu1 %vm725_vm0, %v724_v5  ;;  %v550_v17 = vld [vmem:[%s922_s2] ss:$0 sm:$0xff]  ;;  %s457_s12 = scalar_lea.sflag [#allocation4], %s855_s13  ;;  %s657_s14 = scalar_lea.vmem %s472_s10, 256 }
  0x38   : > { %v255_v10 = vsub.s32 %v252_v7, %v254_v8  ;;  %573 = vmatpush3.msk.msra.mxu1 %vm361_vm3, %v349_v16  ;;  %v552_v22 = vld [vmem:[%s924_s4] ss:$0 sm:$0xff]  ;;  %v447_v31 = vsub.s32 0, %v254_v8  ;;  %p658_p11 = scmp.ne.s32.totalorder %s472_s10, %s657_s14  ;;  %p936_p12 = scmp.ne.s32.totalorder %s930_s30, 0 }
  0x39   : > { %s726_s22 = smov [#allocation5]  }
  0x3a   : > { %p659_p13 = pnand %p658_p11, %p936_p12  ;;  %s661_s17 = sshll.u32 %s726_s22, 4  ;;  %s662_s17 = int_to_ptr.vmem [resolvable:$false] %s661_s17 }
  0x3b   : > { %248 = vmax.xlane.f32.xlu0 %v247_v3  ;;  %s663_s29 = scalar_lea.vmem %s662_s17, 512  ;;  %p664_p3 = scmp.lt.s32.totalorder %s472_s10, %s662_s17 }
  0x3c   : > { %p660_p1 = pneg %p659_p13  ;;  %p665_p5 = scmp.lt.s32.totalorder %s663_s29, %s657_s14 }
  0x3e   : > { %p666_p8 = por %p665_p5, %p664_p3 }
  0x40   : > { %p667_p10 = pnand %p666_p8, %p660_p1 }
  0xc0   : > { %v245_v9 = vpop.xlane.xlu0 %244 }
  0xc1   : > { %v246_v11 = vmul.f32 0.00390625, %v245_v9 }
  0xc3   : > { %v256_v13 = vrot.slane %v246_v11, %v255_v10 }
  0xc4   : > { %v249_v12 = vpop.xlane.xlu0 %248 }
  0xc5   : > { %v262_v14 = vrot.slane %v249_v12, %v255_v10 }
  0xc7   : > { %v265_v15 = vsel %vm264_vm1, %v256_v13, %v262_v14 }
  0xc8   : > { %570 = vmatmul.mubr.msk.f32.vlgmr.msra.gmra.mxu0 %vm274_vm2, %v265_v15 }
 0x188   : > { %v344_v18 = vpop.f32.mrf.mxu0 }
 0x189   : > { %v345_v19 = vadd.f32 %v550_v17, %v344_v18 }
 0x18a   : > { %v571_v20 = vpop.f32.mrf.mxu0 }
 0x18b   : > { %v348_v21 = vmax.f32 %v345_v19, 0.0 }
 0x18d   : > { %575 = vmatmul.mubr.msk.f32.vlgmr.msra.gmra.mxu1 %vm357_vm4, %v348_v21 }
 0x24d   : > { %v431_v23 = vpop.f32.mrf.mxu1 }
 0x24e   : > { %v432_v24 = vadd.f32 %v552_v22, %v431_v23 }
 0x24f   : > { %v576_v25 = vpop.f32.mrf.mxu1 }
 0x250   : > { %v436_v26 = vrot.slane %v432_v24, 1 }
 0x252   : > { %v438_v27 = vadd.f32 %v436_v26, %v432_v24 }
 0x254   : > { %v555_v28 = vmul.f32 -1.442695, %v438_v27 }
 0x256   : > { %625 = vpow2.f32 %v555_v28 }
 0x263   : > { %v626_v29 = vpop.eup %625 }
 0x264   : > { %v442_v30 = vadd.f32 1.0, %v626_v29 }
 0x266   : > { %627 = vrcp.f32 %v442_v30 }
 0x273   : > { %v628_v32 = vpop.eup %627 }
 0x274   : > { %v448_v33 = vrot.slane %v628_v32, %v447_v31 }
 0x276   : > { %450 = vbcast.lane.b32.xlu1 %v448_v33, 256 }
 0x2e8   : > { %v451_v34 = vpop.permute.xlu1 %450 }
 0x2e9   : > { %v452_v35 = vmul.f32 %v451_v34, %v241_v0  ;;  %v453_v36 = vmul.f32 %v451_v34, %v242_v1 }
 0x2eb   : > { %454 = vst [vmem:[%s240_s9] sm:$0xff] %v452_v35  ;;  %455 = vst [vmem:[%s240_s9 + $0x8] sm:$0xff] %v453_v36 }
 0x2ec   : > { %670 = shalt.err (!%p667_p10)
}
 0x2ed   : > { %s671_s16 = scalar_lea.hbm %s883_s15, 256  ;;  %s675_s26 = scalar_lea.hbm %s925_s5, 512 }
 0x2ee   : > { %p672_p2 = scmp.ne.s32.totalorder %s883_s15, %s671_s16  ;;  %p676_p7 = scmp.lt.s32.totalorder %s883_s15, %s925_s5 }
 0x2ef   : > { %p677_p0 = scmp.lt.s32.totalorder %s675_s26, %s671_s16 }
 0x2f0   : > { %p673_p4 = pnand %p672_p2, %p936_p12 }
 0x2f1   : > { %p678_p6 = por %p677_p0, %p676_p7 }
 0x2f2   : > { %p674_p9 = pneg %p673_p4 }
 0x2f4   : > { %p679_p11 = pnand %p678_p6, %p674_p9 }
 0x2f6   : > { %682 = shalt.err (!%p679_p11)
}
 0x2f7   : > { %579 = dma.vmem_to_hbm [thread:$0]  (%p936_p12), %s472_s10, 256, %s883_s15, %s457_s12  }
 0x2f8 PF: > { %s483_s7 = sand.u32 1, %s709_s18   ;;  %p937_p13 = scmp.ne.s32.totalorder %s931_s6, 0 }
 0x2f9   : > { %p938_p1 = scmp.ge.s32.totalorder %s721_s21, 2  ;;  %s484_s9 = scalar_lea.sflag [#allocation4], %s483_s7 }
 0x2fb   : > { %p586_p3 = pnand %p938_p1, %p937_p13 }
 0x2fd   : > { %p587_p5 = pneg %p586_p3 }
 0x2ff   : > { %704 = dma.done.wait (%p587_p5), %s484_s9, 256  }
 0x300   : > { %706 = vsyncadd (%p587_p5), %s484_s9, 4294967040  ;;  %p18_p8 = scmp.ge.s32.totalorder %s782_s24, 4   ;;  %s939_s18 = smov %s713_s19 }
 0x301   : > { %s940_s19 = smov %s717_s20  ;;  %s941_s20 = smov %s794_s27 }
 0x302   : > { %s942_s21 = smov %s782_s24  ;;  %20 = sbr.rel (!%p18_p8) target bundleno = 5 (0x5), region = 85 }
 0x307   :  { %489 = vsyncpa [#allocation3], 1 }
 0x308   :  { %491 = vsyncpa [#allocation3 + $0x1], 1 }
 0x309   :  { %492 = vsyncpa [#allocation4], 1 }
 0x30a   :  { %494 = vsyncpa [#allocation4 + $0x1], 1 }

</bundles_post_ra>
